<compile_context>
chip_gen: v7x
topology: tpu7x:2x2x1
jax: 0.10.0
libtpu: 0.0.40
codegen_flags: <defaults>
</compile_context>

<pallas_src>
import jax
import jax.numpy as jnp
from jax.experimental import pallas as pl
from jax.experimental.pallas import tpu as pltpu

H = 32            # LSTM hidden size (fixed by the module)
OUT = 64          # Linear out_features (fixed by the module)
OUT_PAD = 128     # lane-dense padded output width
BN_EPS = 1e-5
NEG_SLOPE = 0.1


def _traj_encoder_kernel(x_ref, wih_ref, whh_ref, b_ref, wlin_ref, blin_ref,
                         out_ref):
    # x_ref: (T, Bt, F) time-major f32 block.  Weights arrive as bf16.
    T, Bt, F_in = x_ref.shape
    x = x_ref[...]                                   # f32 (T, Bt, F)
    w_ih = wih_ref[...]                              # bf16 (F, 4H), gate order [i,f,g,o]
    w_hh = whh_ref[...]                              # bf16 (H, 4H)
    w_lin = wlin_ref[...]                            # bf16 (T*H, OUT_PAD), BN-folded

    # Hoisted input projection + bias: single (T*Bt, F) @ (F, 4H) bf16 matmul.
    x_flat = x.reshape(T * Bt, F_in).astype(jnp.bfloat16)
    xg = jnp.dot(x_flat, w_ih, preferred_element_type=jnp.float32) + b_ref[...]
    xg = xg.reshape(T, Bt, 4 * H)                    # xg[t] is one contiguous tile

    h = jnp.zeros((Bt, H), jnp.float32)
    c = jnp.zeros((Bt, H), jnp.float32)
    acc = jnp.zeros((Bt, OUT_PAD), jnp.float32)      # Linear accumulator (128 lanes)

    for t in range(T):                               # T small & static -> unrolled
        gates = xg[t] + jnp.dot(h.astype(jnp.bfloat16), w_hh,
                                preferred_element_type=jnp.float32)
        sig = jax.nn.sigmoid(gates)                  # one full-width (Bt, 4H) sigmoid
        i_g = sig[:, 0 * H:1 * H]
        f_g = sig[:, 1 * H:2 * H]
        o_g = sig[:, 3 * H:4 * H]
        g_g = jnp.tanh(gates[:, 2 * H:3 * H])
        c = f_g * c + i_g * g_g
        h = o_g * jnp.tanh(c)

        # Dropout(p=0.5) is identity in eval mode; LeakyReLU(0.1) elementwise.
        h_act = jnp.where(h > 0, h, NEG_SLOPE * h)

        # Final Linear folded into the recurrence (off the h->h critical path).
        # Static row offset == row-major Flatten of the (B, T, H) LSTM output.
        acc = acc + jnp.dot(h_act.astype(jnp.bfloat16),
                            w_lin[t * H:(t + 1) * H, :],
                            preferred_element_type=jnp.float32)

    # BatchNorm (eval) already folded into w_lin / b_lin.  Lane-dense store.
    out_ref[...] = acc + blin_ref[...]


def _round_up(n, m):
    return ((n + m - 1) // m) * m


def trajectory_object_encoder(x, params, *, b_tile=None):
    """x: (B, T, F) batch-first (same as PyTorch LSTM(batch_first=True))."""
    B, T, F_in = x.shape
    assert params["w_lin"].shape == (T * H, OUT)

    # Fold eval-mode BatchNorm1d into the Linear (one-off, at trace time):
    #   y_bn = (y - mean) * gamma / sqrt(var+eps) + beta
    scale = params["gamma"] * jax.lax.rsqrt(params["var"] + BN_EPS)      # (1, OUT)
    w_lin = params["w_lin"] * scale                                       # (T*H, OUT)
    b_lin = (params["b_lin"] - params["mean"]) * scale + params["beta"]   # (1, OUT)

    # Lane-dense output: zero-pad to 128 columns; slice back after the call.
    w_lin = jnp.pad(w_lin, ((0, 0), (0, OUT_PAD - OUT))).astype(jnp.bfloat16)
    b_lin = jnp.pad(b_lin, ((0, 0), (0, OUT_PAD - OUT)))                  # f32

    w_ih = params["w_ih"].astype(jnp.bfloat16)
    w_hh = params["w_hh"].astype(jnp.bfloat16)
    b = params["b"]                                                       # f32

    if b_tile is None:
        # Derive tile from B (caps padding at <=7 rows/tile) and keep grid >= 2
        # so the "parallel" batch axis shards across v7x's two TensorCores.
        # Note: the (T, b_tile, F=4) x block lane-pads 4->128 in VMEM, so each
        # buffer is ~T*b_tile*512 B (x2 for double buffering); b_tile=512 keeps
        # that ~4 MiB, well inside every generation's scoped VMEM.
        n_tiles = max(2, -(-B // 512))
        b_tile = _round_up(-(-B // n_tiles), 8)
    assert b_tile % 8 == 0
    Bp = _round_up(B, b_tile)

    # Time-major layout so each timestep slab is a contiguous (b_tile, 4H) tile;
    # zero-pad the batch up to a multiple of the batch tile.
    xt = jnp.transpose(x, (1, 0, 2))
    if Bp != B:
        xt = jnp.pad(xt, ((0, 0), (0, Bp - B), (0, 0)))

    grid = (Bp // b_tile,)
    out = pl.pallas_call(
        _traj_encoder_kernel,
        out_shape=jax.ShapeDtypeStruct((Bp, OUT_PAD), jnp.float32),
        grid_spec=pltpu.PrefetchScalarGridSpec(
            num_scalar_prefetch=0,
            grid=grid,
            in_specs=[
                pl.BlockSpec((T, b_tile, F_in), lambda i: (0, i, 0)),   # x (time-major)
                pl.BlockSpec((F_in, 4 * H), lambda i: (0, 0)),          # W_ih (bf16, resident)
                pl.BlockSpec((H, 4 * H), lambda i: (0, 0)),             # W_hh (bf16, resident)
                pl.BlockSpec((1, 4 * H), lambda i: (0, 0)),             # b_ih + b_hh (f32)
                pl.BlockSpec((T * H, OUT_PAD), lambda i: (0, 0)),       # W_lin (BN-folded, padded)
                pl.BlockSpec((1, OUT_PAD), lambda i: (0, 0)),           # b_lin (BN-folded, padded)
            ],
            out_specs=pl.BlockSpec((b_tile, OUT_PAD), lambda i: (i, 0)),
        ),
        compiler_params=pltpu.CompilerParams(
            dimension_semantics=("parallel",),
            vmem_limit_bytes=32 << 20),
    )(xt, w_ih, w_hh, b, w_lin, b_lin)
    return out[:B, :OUT]


def init_params(key, n_features, trajectory_length):
    """Deterministic synthetic parameters with PyTorch-like init scales."""
    ks = jax.random.split(key, 4)
    lstm_scale = 1.0 / jnp.sqrt(jnp.float32(H))
    lin_scale = 1.0 / jnp.sqrt(jnp.float32(trajectory_length * H))
    return {
        # LSTM weights, stored transposed (in_dim, 4H); gate order [i, f, g, o].
        "w_ih": jax.random.uniform(ks[0], (n_features, 4 * H), jnp.float32,
                                   -lstm_scale, lstm_scale),
        "w_hh": jax.random.uniform(ks[1], (H, 4 * H), jnp.float32,
                                   -lstm_scale, lstm_scale),
        "b": jax.random.uniform(ks[2], (1, 4 * H), jnp.float32,
                                -lstm_scale, lstm_scale),
        # Linear(T*32 -> 64), stored transposed.
        "w_lin": jax.random.uniform(ks[3], (trajectory_length * H, OUT),
                                    jnp.float32, -lin_scale, lin_scale),
        "b_lin": jnp.zeros((1, OUT), jnp.float32),
        # BatchNorm1d(64) defaults: gamma=1, beta=0, running_mean=0, running_var=1.
        "gamma": jnp.ones((1, OUT), jnp.float32),
        "beta": jnp.zeros((1, OUT), jnp.float32),
        "mean": jnp.zeros((1, OUT), jnp.float32),
        "var": jnp.ones((1, OUT), jnp.float32),
    }


def reference_forward(x, p):
    """Pure-JAX f32 reference replicating the PyTorch eval-mode forward."""
    B, T, _ = x.shape
    h = jnp.zeros((B, H), jnp.float32)
    c = jnp.zeros((B, H), jnp.float32)
    hs = []
    for t in range(T):
        gates = x[:, t, :] @ p["w_ih"] + h @ p["w_hh"] + p["b"]
        i_g = jax.nn.sigmoid(gates[:, 0 * H:1 * H])
        f_g = jax.nn.sigmoid(gates[:, 1 * H:2 * H])
        g_g = jnp.tanh(gates[:, 2 * H:3 * H])
        o_g = jax.nn.sigmoid(gates[:, 3 * H:4 * H])
        c = f_g * c + i_g * g_g
        h = o_g * jnp.tanh(c)
        hs.append(h)
    seq = jnp.stack(hs, axis=1)                           # (B, T, H)
    seq = jnp.where(seq > 0, seq, NEG_SLOPE * seq)        # dropout (eval) + LeakyReLU
    flat = seq.reshape(B, T * H)                          # Flatten (row-major)
    y = flat @ p["w_lin"] + p["b_lin"]
    return (y - p["mean"]) * jax.lax.rsqrt(p["var"] + BN_EPS) * p["gamma"] + p["beta"]


if __name__ == "__main__":
    # TODO(synk): training-mode Dropout / BatchNorm batch-statistics update are not
    # implemented (eval semantics only).
    T, F_in = 8, 4             # trajectory_length, n_features
    key = jax.random.PRNGKey(0)
    k_x, k_p, k_x2 = jax.random.split(key, 3)
    params = init_params(k_p, n_features=F_in, trajectory_length=T)

    # Small canonical case: B=2 (padded to one 8-row tile inside the wrapper).
    B = 2
    x = jax.random.normal(k_x, (B, T, F_in), jnp.float32)
    out = jax.block_until_ready(trajectory_object_encoder(x, params))
    ref = reference_forward(x, params)
    assert out.shape == (B, OUT)
    # bf16 MXU operands vs f32 reference -> loosened tolerance.
    assert jnp.allclose(out, ref, atol=2e-2, rtol=2e-2), "mismatch vs JAX reference (B=2)"

    # Multi-tile grid + padding path: B=20 with b_tile=8 -> padded to 24, grid=(3,).
    B2 = 20
    x2 = jax.random.normal(k_x2, (B2, T, F_in), jnp.float32)
    out2 = jax.block_until_ready(trajectory_object_encoder(x2, params, b_tile=8))
    ref2 = reference_forward(x2, params)
    assert out2.shape == (B2, OUT)
    assert jnp.allclose(out2, ref2, atol=2e-2, rtol=2e-2), "mismatch vs JAX reference (B=20)"

    print("KERNEL_OK")
</pallas_src>

<mosaic_0001>
module attributes {stable_mosaic.version = 11 : i64} {
  func.func @_traj_encoder_kernel(%arg0: i32, %arg1: memref<8x8x4xf32, #tpu.memory_space<vmem>>, %arg2: memref<4x128xbf16, #tpu.memory_space<vmem>>, %arg3: memref<32x128xbf16, #tpu.memory_space<vmem>>, %arg4: memref<1x128xf32, #tpu.memory_space<vmem>>, %arg5: memref<256x128xbf16, #tpu.memory_space<vmem>>, %arg6: memref<1x128xf32, #tpu.memory_space<vmem>>, %arg7: memref<8x128xf32, #tpu.memory_space<vmem>>) attributes {dimension_semantics = [#tpu.dimension_semantics<parallel>], iteration_bounds = array<i64: 1>, scalar_prefetch = 0 : i64, scratch_operands = 0 : i64, tpu.core_type = #tpu.core_type<tc>, window_params = [{transform_indices = @transform_0, window_bounds = array<i64: 8, 8, 4>}, {pipeline_mode = #tpu.pipeline_mode<synchronous>, transform_indices = @transform_1, window_bounds = array<i64: 4, 128>}, {pipeline_mode = #tpu.pipeline_mode<synchronous>, transform_indices = @transform_2, window_bounds = array<i64: 32, 128>}, {pipeline_mode = #tpu.pipeline_mode<synchronous>, transform_indices = @transform_3, window_bounds = array<i64: 1, 128>}, {pipeline_mode = #tpu.pipeline_mode<synchronous>, transform_indices = @transform_4, window_bounds = array<i64: 256, 128>}, {pipeline_mode = #tpu.pipeline_mode<synchronous>, transform_indices = @transform_5, window_bounds = array<i64: 1, 128>}, {transform_indices = @transform_6, window_bounds = array<i64: 8, 128>}]} {
    %c0 = arith.constant 0 : index
    %c0_0 = arith.constant 0 : index
    %c0_1 = arith.constant 0 : index
    %0 = vector.load %arg1[%c0, %c0_0, %c0_1] : memref<8x8x4xf32, #tpu.memory_space<vmem>>, vector<8x8x4xf32>
    %c0_2 = arith.constant 0 : index
    %c0_3 = arith.constant 0 : index
    %1 = vector.load %arg2[%c0_2, %c0_3] : memref<4x128xbf16, #tpu.memory_space<vmem>>, vector<4x128xbf16>
    %c0_4 = arith.constant 0 : index
    %c0_5 = arith.constant 0 : index
    %2 = vector.load %arg3[%c0_4, %c0_5] : memref<32x128xbf16, #tpu.memory_space<vmem>>, vector<32x128xbf16>
    %c0_6 = arith.constant 0 : index
    %c0_7 = arith.constant 0 : index
    %3 = vector.load %arg5[%c0_6, %c0_7] : memref<256x128xbf16, #tpu.memory_space<vmem>>, vector<256x128xbf16>
    %4 = vector.shape_cast %0 : vector<8x8x4xf32> to vector<64x4xf32>
    %5 = arith.truncf %4 : vector<64x4xf32> to vector<64x4xbf16>
    %cst = arith.constant dense<0.000000e+00> : vector<64x128xf32>
    %6 = tpu.matmul %5, %1, %cst {dimension_numbers = #tpu.dot_dimension_numbers<[1], [0], [0], [1], [0, 0, 1, 1], [], []>} : vector<64x4xbf16>, vector<4x128xbf16>, vector<64x128xf32> -> vector<64x128xf32>
    %c0_8 = arith.constant 0 : index
    %c0_9 = arith.constant 0 : index
    %7 = vector.load %arg4[%c0_8, %c0_9] : memref<1x128xf32, #tpu.memory_space<vmem>>, vector<1x128xf32>
    %8 = vector.broadcast %7 : vector<1x128xf32> to vector<64x128xf32>
    %9 = arith.addf %6, %8 : vector<64x128xf32>
    %10 = vector.shape_cast %9 : vector<64x128xf32> to vector<8x8x128xf32>
    %cst_10 = arith.constant 0.000000e+00 : f32
    %11 = vector.broadcast %cst_10 : f32 to vector<8x32xf32>
    %cst_11 = arith.constant 0.000000e+00 : f32
    %12 = vector.broadcast %cst_11 : f32 to vector<8x32xf32>
    %cst_12 = arith.constant 0.000000e+00 : f32
    %13 = vector.broadcast %cst_12 : f32 to vector<8x128xf32>
    %14 = vector.extract_strided_slice %10 {offsets = [0, 0, 0], sizes = [1, 8, 128], strides = [1, 1, 1]} : vector<8x8x128xf32> to vector<1x8x128xf32>
    %15 = vector.shape_cast %14 : vector<1x8x128xf32> to vector<8x128xf32>
    %16 = arith.truncf %11 : vector<8x32xf32> to vector<8x32xbf16>
    %cst_13 = arith.constant dense<0.000000e+00> : vector<8x128xf32>
    %17 = tpu.matmul %16, %2, %cst_13 {dimension_numbers = #tpu.dot_dimension_numbers<[1], [0], [0], [1], [0, 0, 1, 1], [], []>} : vector<8x32xbf16>, vector<32x128xbf16>, vector<8x128xf32> -> vector<8x128xf32>
    %18 = arith.addf %15, %17 : vector<8x128xf32>
    %19 = arith.negf %18 : vector<8x128xf32>
    %20 = math.exp %19 : vector<8x128xf32>
    %cst_14 = arith.constant 1.000000e+00 : f32
    %21 = vector.broadcast %cst_14 : f32 to vector<8x128xf32>
    %22 = arith.addf %21, %20 : vector<8x128xf32>
    %23 = arith.divf %21, %22 : vector<8x128xf32>
    %24 = vector.extract_strided_slice %23 {offsets = [0, 0], sizes = [8, 32], strides = [1, 1]} : vector<8x128xf32> to vector<8x32xf32>
    %25 = vector.extract_strided_slice %23 {offsets = [0, 32], sizes = [8, 32], strides = [1, 1]} : vector<8x128xf32> to vector<8x32xf32>
    %26 = vector.extract_strided_slice %23 {offsets = [0, 96], sizes = [8, 32], strides = [1, 1]} : vector<8x128xf32> to vector<8x32xf32>
    %27 = vector.extract_strided_slice %18 {offsets = [0, 64], sizes = [8, 32], strides = [1, 1]} : vector<8x128xf32> to vector<8x32xf32>
    %28 = math.tanh %27 : vector<8x32xf32>
    %29 = arith.mulf %25, %12 : vector<8x32xf32>
    %30 = arith.mulf %24, %28 : vector<8x32xf32>
    %31 = arith.addf %29, %30 : vector<8x32xf32>
    %32 = math.tanh %31 : vector<8x32xf32>
    %33 = arith.mulf %26, %32 : vector<8x32xf32>
    %cst_15 = arith.constant 0.000000e+00 : f32
    %34 = vector.broadcast %cst_15 : f32 to vector<8x32xf32>
    %35 = arith.cmpf ogt, %33, %34 : vector<8x32xf32>
    %cst_16 = arith.constant 1.000000e-01 : f32
    %36 = vector.broadcast %cst_16 : f32 to vector<8x32xf32>
    %37 = arith.mulf %36, %33 : vector<8x32xf32>
    %38 = arith.select %35, %33, %37 : vector<8x32xi1>, vector<8x32xf32>
    %39 = arith.truncf %38 : vector<8x32xf32> to vector<8x32xbf16>
    %40 = vector.extract_strided_slice %3 {offsets = [0, 0], sizes = [32, 128], strides = [1, 1]} : vector<256x128xbf16> to vector<32x128xbf16>
    %cst_17 = arith.constant dense<0.000000e+00> : vector<8x128xf32>
    %41 = tpu.matmul %39, %40, %cst_17 {dimension_numbers = #tpu.dot_dimension_numbers<[1], [0], [0], [1], [0, 0, 1, 1], [], []>} : vector<8x32xbf16>, vector<32x128xbf16>, vector<8x128xf32> -> vector<8x128xf32>
    %42 = arith.addf %13, %41 : vector<8x128xf32>
    %43 = vector.extract_strided_slice %10 {offsets = [1, 0, 0], sizes = [1, 8, 128], strides = [1, 1, 1]} : vector<8x8x128xf32> to vector<1x8x128xf32>
    %44 = vector.shape_cast %43 : vector<1x8x128xf32> to vector<8x128xf32>
    %45 = arith.truncf %33 : vector<8x32xf32> to vector<8x32xbf16>
    %cst_18 = arith.constant dense<0.000000e+00> : vector<8x128xf32>
    %46 = tpu.matmul %45, %2, %cst_18 {dimension_numbers = #tpu.dot_dimension_numbers<[1], [0], [0], [1], [0, 0, 1, 1], [], []>} : vector<8x32xbf16>, vector<32x128xbf16>, vector<8x128xf32> -> vector<8x128xf32>
    %47 = arith.addf %44, %46 : vector<8x128xf32>
    %48 = arith.negf %47 : vector<8x128xf32>
    %49 = math.exp %48 : vector<8x128xf32>
    %cst_19 = arith.constant 1.000000e+00 : f32
    %50 = vector.broadcast %cst_19 : f32 to vector<8x128xf32>
    %51 = arith.addf %50, %49 : vector<8x128xf32>
    %52 = arith.divf %50, %51 : vector<8x128xf32>
    %53 = vector.extract_strided_slice %52 {offsets = [0, 0], sizes = [8, 32], strides = [1, 1]} : vector<8x128xf32> to vector<8x32xf32>
    %54 = vector.extract_strided_slice %52 {offsets = [0, 32], sizes = [8, 32], strides = [1, 1]} : vector<8x128xf32> to vector<8x32xf32>
    %55 = vector.extract_strided_slice %52 {offsets = [0, 96], sizes = [8, 32], strides = [1, 1]} : vector<8x128xf32> to vector<8x32xf32>
    %56 = vector.extract_strided_slice %47 {offsets = [0, 64], sizes = [8, 32], strides = [1, 1]} : vector<8x128xf32> to vector<8x32xf32>
    %57 = math.tanh %56 : vector<8x32xf32>
    %58 = arith.mulf %54, %31 : vector<8x32xf32>
    %59 = arith.mulf %53, %57 : vector<8x32xf32>
    %60 = arith.addf %58, %59 : vector<8x32xf32>
    %61 = math.tanh %60 : vector<8x32xf32>
    %62 = arith.mulf %55, %61 : vector<8x32xf32>
    %cst_20 = arith.constant 0.000000e+00 : f32
    %63 = vector.broadcast %cst_20 : f32 to vector<8x32xf32>
    %64 = arith.cmpf ogt, %62, %63 : vector<8x32xf32>
    %cst_21 = arith.constant 1.000000e-01 : f32
    %65 = vector.broadcast %cst_21 : f32 to vector<8x32xf32>
    %66 = arith.mulf %65, %62 : vector<8x32xf32>
    %67 = arith.select %64, %62, %66 : vector<8x32xi1>, vector<8x32xf32>
    %68 = arith.truncf %67 : vector<8x32xf32> to vector<8x32xbf16>
    %69 = vector.extract_strided_slice %3 {offsets = [32, 0], sizes = [32, 128], strides = [1, 1]} : vector<256x128xbf16> to vector<32x128xbf16>
    %cst_22 = arith.constant dense<0.000000e+00> : vector<8x128xf32>
    %70 = tpu.matmul %68, %69, %cst_22 {dimension_numbers = #tpu.dot_dimension_numbers<[1], [0], [0], [1], [0, 0, 1, 1], [], []>} : vector<8x32xbf16>, vector<32x128xbf16>, vector<8x128xf32> -> vector<8x128xf32>
    %71 = arith.addf %42, %70 : vector<8x128xf32>
    %72 = vector.extract_strided_slice %10 {offsets = [2, 0, 0], sizes = [1, 8, 128], strides = [1, 1, 1]} : vector<8x8x128xf32> to vector<1x8x128xf32>
    %73 = vector.shape_cast %72 : vector<1x8x128xf32> to vector<8x128xf32>
    %74 = arith.truncf %62 : vector<8x32xf32> to vector<8x32xbf16>
    %cst_23 = arith.constant dense<0.000000e+00> : vector<8x128xf32>
    %75 = tpu.matmul %74, %2, %cst_23 {dimension_numbers = #tpu.dot_dimension_numbers<[1], [0], [0], [1], [0, 0, 1, 1], [], []>} : vector<8x32xbf16>, vector<32x128xbf16>, vector<8x128xf32> -> vector<8x128xf32>
    %76 = arith.addf %73, %75 : vector<8x128xf32>
    %77 = arith.negf %76 : vector<8x128xf32>
    %78 = math.exp %77 : vector<8x128xf32>
    %cst_24 = arith.constant 1.000000e+00 : f32
    %79 = vector.broadcast %cst_24 : f32 to vector<8x128xf32>
    %80 = arith.addf %79, %78 : vector<8x128xf32>
    %81 = arith.divf %79, %80 : vector<8x128xf32>
    %82 = vector.extract_strided_slice %81 {offsets = [0, 0], sizes = [8, 32], strides = [1, 1]} : vector<8x128xf32> to vector<8x32xf32>
    %83 = vector.extract_strided_slice %81 {offsets = [0, 32], sizes = [8, 32], strides = [1, 1]} : vector<8x128xf32> to vector<8x32xf32>
    %84 = vector.extract_strided_slice %81 {offsets = [0, 96], sizes = [8, 32], strides = [1, 1]} : vector<8x128xf32> to vector<8x32xf32>
    %85 = vector.extract_strided_slice %76 {offsets = [0, 64], sizes = [8, 32], strides = [1, 1]} : vector<8x128xf32> to vector<8x32xf32>
    %86 = math.tanh %85 : vector<8x32xf32>
    %87 = arith.mulf %83, %60 : vector<8x32xf32>
    %88 = arith.mulf %82, %86 : vector<8x32xf32>
    %89 = arith.addf %87, %88 : vector<8x32xf32>
    %90 = math.tanh %89 : vector<8x32xf32>
    %91 = arith.mulf %84, %90 : vector<8x32xf32>
    %cst_25 = arith.constant 0.000000e+00 : f32
    %92 = vector.broadcast %cst_25 : f32 to vector<8x32xf32>
    %93 = arith.cmpf ogt, %91, %92 : vector<8x32xf32>
    %cst_26 = arith.constant 1.000000e-01 : f32
    %94 = vector.broadcast %cst_26 : f32 to vector<8x32xf32>
    %95 = arith.mulf %94, %91 : vector<8x32xf32>
    %96 = arith.select %93, %91, %95 : vector<8x32xi1>, vector<8x32xf32>
    %97 = arith.truncf %96 : vector<8x32xf32> to vector<8x32xbf16>
    %98 = vector.extract_strided_slice %3 {offsets = [64, 0], sizes = [32, 128], strides = [1, 1]} : vector<256x128xbf16> to vector<32x128xbf16>
    %cst_27 = arith.constant dense<0.000000e+00> : vector<8x128xf32>
    %99 = tpu.matmul %97, %98, %cst_27 {dimension_numbers = #tpu.dot_dimension_numbers<[1], [0], [0], [1], [0, 0, 1, 1], [], []>} : vector<8x32xbf16>, vector<32x128xbf16>, vector<8x128xf32> -> vector<8x128xf32>
    %100 = arith.addf %71, %99 : vector<8x128xf32>
    %101 = vector.extract_strided_slice %10 {offsets = [3, 0, 0], sizes = [1, 8, 128], strides = [1, 1, 1]} : vector<8x8x128xf32> to vector<1x8x128xf32>
    %102 = vector.shape_cast %101 : vector<1x8x128xf32> to vector<8x128xf32>
    %103 = arith.truncf %91 : vector<8x32xf32> to vector<8x32xbf16>
    %cst_28 = arith.constant dense<0.000000e+00> : vector<8x128xf32>
    %104 = tpu.matmul %103, %2, %cst_28 {dimension_numbers = #tpu.dot_dimension_numbers<[1], [0], [0], [1], [0, 0, 1, 1], [], []>} : vector<8x32xbf16>, vector<32x128xbf16>, vector<8x128xf32> -> vector<8x128xf32>
    %105 = arith.addf %102, %104 : vector<8x128xf32>
    %106 = arith.negf %105 : vector<8x128xf32>
    %107 = math.exp %106 : vector<8x128xf32>
    %cst_29 = arith.constant 1.000000e+00 : f32
    %108 = vector.broadcast %cst_29 : f32 to vector<8x128xf32>
    %109 = arith.addf %108, %107 : vector<8x128xf32>
    %110 = arith.divf %108, %109 : vector<8x128xf32>
    %111 = vector.extract_strided_slice %110 {offsets = [0, 0], sizes = [8, 32], strides = [1, 1]} : vector<8x128xf32> to vector<8x32xf32>
    %112 = vector.extract_strided_slice %110 {offsets = [0, 32], sizes = [8, 32], strides = [1, 1]} : vector<8x128xf32> to vector<8x32xf32>
    %113 = vector.extract_strided_slice %110 {offsets = [0, 96], sizes = [8, 32], strides = [1, 1]} : vector<8x128xf32> to vector<8x32xf32>
    %114 = vector.extract_strided_slice %105 {offsets = [0, 64], sizes = [8, 32], strides = [1, 1]} : vector<8x128xf32> to vector<8x32xf32>
    %115 = math.tanh %114 : vector<8x32xf32>
    %116 = arith.mulf %112, %89 : vector<8x32xf32>
    %117 = arith.mulf %111, %115 : vector<8x32xf32>
    %118 = arith.addf %116, %117 : vector<8x32xf32>
    %119 = math.tanh %118 : vector<8x32xf32>
    %120 = arith.mulf %113, %119 : vector<8x32xf32>
    %cst_30 = arith.constant 0.000000e+00 : f32
    %121 = vector.broadcast %cst_30 : f32 to vector<8x32xf32>
    %122 = arith.cmpf ogt, %120, %121 : vector<8x32xf32>
    %cst_31 = arith.constant 1.000000e-01 : f32
    %123 = vector.broadcast %cst_31 : f32 to vector<8x32xf32>
    %124 = arith.mulf %123, %120 : vector<8x32xf32>
    %125 = arith.select %122, %120, %124 : vector<8x32xi1>, vector<8x32xf32>
    %126 = arith.truncf %125 : vector<8x32xf32> to vector<8x32xbf16>
    %127 = vector.extract_strided_slice %3 {offsets = [96, 0], sizes = [32, 128], strides = [1, 1]} : vector<256x128xbf16> to vector<32x128xbf16>
    %cst_32 = arith.constant dense<0.000000e+00> : vector<8x128xf32>
    %128 = tpu.matmul %126, %127, %cst_32 {dimension_numbers = #tpu.dot_dimension_numbers<[1], [0], [0], [1], [0, 0, 1, 1], [], []>} : vector<8x32xbf16>, vector<32x128xbf16>, vector<8x128xf32> -> vector<8x128xf32>
    %129 = arith.addf %100, %128 : vector<8x128xf32>
    %130 = vector.extract_strided_slice %10 {offsets = [4, 0, 0], sizes = [1, 8, 128], strides = [1, 1, 1]} : vector<8x8x128xf32> to vector<1x8x128xf32>
    %131 = vector.shape_cast %130 : vector<1x8x128xf32> to vector<8x128xf32>
    %132 = arith.truncf %120 : vector<8x32xf32> to vector<8x32xbf16>
    %cst_33 = arith.constant dense<0.000000e+00> : vector<8x128xf32>
    %133 = tpu.matmul %132, %2, %cst_33 {dimension_numbers = #tpu.dot_dimension_numbers<[1], [0], [0], [1], [0, 0, 1, 1], [], []>} : vector<8x32xbf16>, vector<32x128xbf16>, vector<8x128xf32> -> vector<8x128xf32>
    %134 = arith.addf %131, %133 : vector<8x128xf32>
    %135 = arith.negf %134 : vector<8x128xf32>
    %136 = math.exp %135 : vector<8x128xf32>
    %cst_34 = arith.constant 1.000000e+00 : f32
    %137 = vector.broadcast %cst_34 : f32 to vector<8x128xf32>
    %138 = arith.addf %137, %136 : vector<8x128xf32>
    %139 = arith.divf %137, %138 : vector<8x128xf32>
    %140 = vector.extract_strided_slice %139 {offsets = [0, 0], sizes = [8, 32], strides = [1, 1]} : vector<8x128xf32> to vector<8x32xf32>
    %141 = vector.extract_strided_slice %139 {offsets = [0, 32], sizes = [8, 32], strides = [1, 1]} : vector<8x128xf32> to vector<8x32xf32>
    %142 = vector.extract_strided_slice %139 {offsets = [0, 96], sizes = [8, 32], strides = [1, 1]} : vector<8x128xf32> to vector<8x32xf32>
    %143 = vector.extract_strided_slice %134 {offsets = [0, 64], sizes = [8, 32], strides = [1, 1]} : vector<8x128xf32> to vector<8x32xf32>
    %144 = math.tanh %143 : vector<8x32xf32>
    %145 = arith.mulf %141, %118 : vector<8x32xf32>
    %146 = arith.mulf %140, %144 : vector<8x32xf32>
    %147 = arith.addf %145, %146 : vector<8x32xf32>
    %148 = math.tanh %147 : vector<8x32xf32>
    %149 = arith.mulf %142, %148 : vector<8x32xf32>
    %cst_35 = arith.constant 0.000000e+00 : f32
    %150 = vector.broadcast %cst_35 : f32 to vector<8x32xf32>
    %151 = arith.cmpf ogt, %149, %150 : vector<8x32xf32>
    %cst_36 = arith.constant 1.000000e-01 : f32
    %152 = vector.broadcast %cst_36 : f32 to vector<8x32xf32>
    %153 = arith.mulf %152, %149 : vector<8x32xf32>
    %154 = arith.select %151, %149, %153 : vector<8x32xi1>, vector<8x32xf32>
    %155 = arith.truncf %154 : vector<8x32xf32> to vector<8x32xbf16>
    %156 = vector.extract_strided_slice %3 {offsets = [128, 0], sizes = [32, 128], strides = [1, 1]} : vector<256x128xbf16> to vector<32x128xbf16>
    %cst_37 = arith.constant dense<0.000000e+00> : vector<8x128xf32>
    %157 = tpu.matmul %155, %156, %cst_37 {dimension_numbers = #tpu.dot_dimension_numbers<[1], [0], [0], [1], [0, 0, 1, 1], [], []>} : vector<8x32xbf16>, vector<32x128xbf16>, vector<8x128xf32> -> vector<8x128xf32>
    %158 = arith.addf %129, %157 : vector<8x128xf32>
    %159 = vector.extract_strided_slice %10 {offsets = [5, 0, 0], sizes = [1, 8, 128], strides = [1, 1, 1]} : vector<8x8x128xf32> to vector<1x8x128xf32>
    %160 = vector.shape_cast %159 : vector<1x8x128xf32> to vector<8x128xf32>
    %161 = arith.truncf %149 : vector<8x32xf32> to vector<8x32xbf16>
    %cst_38 = arith.constant dense<0.000000e+00> : vector<8x128xf32>
    %162 = tpu.matmul %161, %2, %cst_38 {dimension_numbers = #tpu.dot_dimension_numbers<[1], [0], [0], [1], [0, 0, 1, 1], [], []>} : vector<8x32xbf16>, vector<32x128xbf16>, vector<8x128xf32> -> vector<8x128xf32>
    %163 = arith.addf %160, %162 : vector<8x128xf32>
    %164 = arith.negf %163 : vector<8x128xf32>
    %165 = math.exp %164 : vector<8x128xf32>
    %cst_39 = arith.constant 1.000000e+00 : f32
    %166 = vector.broadcast %cst_39 : f32 to vector<8x128xf32>
    %167 = arith.addf %166, %165 : vector<8x128xf32>
    %168 = arith.divf %166, %167 : vector<8x128xf32>
    %169 = vector.extract_strided_slice %168 {offsets = [0, 0], sizes = [8, 32], strides = [1, 1]} : vector<8x128xf32> to vector<8x32xf32>
    %170 = vector.extract_strided_slice %168 {offsets = [0, 32], sizes = [8, 32], strides = [1, 1]} : vector<8x128xf32> to vector<8x32xf32>
    %171 = vector.extract_strided_slice %168 {offsets = [0, 96], sizes = [8, 32], strides = [1, 1]} : vector<8x128xf32> to vector<8x32xf32>
    %172 = vector.extract_strided_slice %163 {offsets = [0, 64], sizes = [8, 32], strides = [1, 1]} : vector<8x128xf32> to vector<8x32xf32>
    %173 = math.tanh %172 : vector<8x32xf32>
    %174 = arith.mulf %170, %147 : vector<8x32xf32>
    %175 = arith.mulf %169, %173 : vector<8x32xf32>
    %176 = arith.addf %174, %175 : vector<8x32xf32>
    %177 = math.tanh %176 : vector<8x32xf32>
    %178 = arith.mulf %171, %177 : vector<8x32xf32>
    %cst_40 = arith.constant 0.000000e+00 : f32
    %179 = vector.broadcast %cst_40 : f32 to vector<8x32xf32>
    %180 = arith.cmpf ogt, %178, %179 : vector<8x32xf32>
    %cst_41 = arith.constant 1.000000e-01 : f32
    %181 = vector.broadcast %cst_41 : f32 to vector<8x32xf32>
    %182 = arith.mulf %181, %178 : vector<8x32xf32>
    %183 = arith.select %180, %178, %182 : vector<8x32xi1>, vector<8x32xf32>
    %184 = arith.truncf %183 : vector<8x32xf32> to vector<8x32xbf16>
    %185 = vector.extract_strided_slice %3 {offsets = [160, 0], sizes = [32, 128], strides = [1, 1]} : vector<256x128xbf16> to vector<32x128xbf16>
    %cst_42 = arith.constant dense<0.000000e+00> : vector<8x128xf32>
    %186 = tpu.matmul %184, %185, %cst_42 {dimension_numbers = #tpu.dot_dimension_numbers<[1], [0], [0], [1], [0, 0, 1, 1], [], []>} : vector<8x32xbf16>, vector<32x128xbf16>, vector<8x128xf32> -> vector<8x128xf32>
    %187 = arith.addf %158, %186 : vector<8x128xf32>
    %188 = vector.extract_strided_slice %10 {offsets = [6, 0, 0], sizes = [1, 8, 128], strides = [1, 1, 1]} : vector<8x8x128xf32> to vector<1x8x128xf32>
    %189 = vector.shape_cast %188 : vector<1x8x128xf32> to vector<8x128xf32>
    %190 = arith.truncf %178 : vector<8x32xf32> to vector<8x32xbf16>
    %cst_43 = arith.constant dense<0.000000e+00> : vector<8x128xf32>
    %191 = tpu.matmul %190, %2, %cst_43 {dimension_numbers = #tpu.dot_dimension_numbers<[1], [0], [0], [1], [0, 0, 1, 1], [], []>} : vector<8x32xbf16>, vector<32x128xbf16>, vector<8x128xf32> -> vector<8x128xf32>
    %192 = arith.addf %189, %191 : vector<8x128xf32>
    %193 = arith.negf %192 : vector<8x128xf32>
    %194 = math.exp %193 : vector<8x128xf32>
    %cst_44 = arith.constant 1.000000e+00 : f32
    %195 = vector.broadcast %cst_44 : f32 to vector<8x128xf32>
    %196 = arith.addf %195, %194 : vector<8x128xf32>
    %197 = arith.divf %195, %196 : vector<8x128xf32>
    %198 = vector.extract_strided_slice %197 {offsets = [0, 0], sizes = [8, 32], strides = [1, 1]} : vector<8x128xf32> to vector<8x32xf32>
    %199 = vector.extract_strided_slice %197 {offsets = [0, 32], sizes = [8, 32], strides = [1, 1]} : vector<8x128xf32> to vector<8x32xf32>
    %200 = vector.extract_strided_slice %197 {offsets = [0, 96], sizes = [8, 32], strides = [1, 1]} : vector<8x128xf32> to vector<8x32xf32>
    %201 = vector.extract_strided_slice %192 {offsets = [0, 64], sizes = [8, 32], strides = [1, 1]} : vector<8x128xf32> to vector<8x32xf32>
    %202 = math.tanh %201 : vector<8x32xf32>
    %203 = arith.mulf %199, %176 : vector<8x32xf32>
    %204 = arith.mulf %198, %202 : vector<8x32xf32>
    %205 = arith.addf %203, %204 : vector<8x32xf32>
    %206 = math.tanh %205 : vector<8x32xf32>
    %207 = arith.mulf %200, %206 : vector<8x32xf32>
    %cst_45 = arith.constant 0.000000e+00 : f32
    %208 = vector.broadcast %cst_45 : f32 to vector<8x32xf32>
    %209 = arith.cmpf ogt, %207, %208 : vector<8x32xf32>
    %cst_46 = arith.constant 1.000000e-01 : f32
    %210 = vector.broadcast %cst_46 : f32 to vector<8x32xf32>
    %211 = arith.mulf %210, %207 : vector<8x32xf32>
    %212 = arith.select %209, %207, %211 : vector<8x32xi1>, vector<8x32xf32>
    %213 = arith.truncf %212 : vector<8x32xf32> to vector<8x32xbf16>
    %214 = vector.extract_strided_slice %3 {offsets = [192, 0], sizes = [32, 128], strides = [1, 1]} : vector<256x128xbf16> to vector<32x128xbf16>
    %cst_47 = arith.constant dense<0.000000e+00> : vector<8x128xf32>
    %215 = tpu.matmul %213, %214, %cst_47 {dimension_numbers = #tpu.dot_dimension_numbers<[1], [0], [0], [1], [0, 0, 1, 1], [], []>} : vector<8x32xbf16>, vector<32x128xbf16>, vector<8x128xf32> -> vector<8x128xf32>
    %216 = arith.addf %187, %215 : vector<8x128xf32>
    %217 = vector.extract_strided_slice %10 {offsets = [7, 0, 0], sizes = [1, 8, 128], strides = [1, 1, 1]} : vector<8x8x128xf32> to vector<1x8x128xf32>
    %218 = vector.shape_cast %217 : vector<1x8x128xf32> to vector<8x128xf32>
    %219 = arith.truncf %207 : vector<8x32xf32> to vector<8x32xbf16>
    %cst_48 = arith.constant dense<0.000000e+00> : vector<8x128xf32>
    %220 = tpu.matmul %219, %2, %cst_48 {dimension_numbers = #tpu.dot_dimension_numbers<[1], [0], [0], [1], [0, 0, 1, 1], [], []>} : vector<8x32xbf16>, vector<32x128xbf16>, vector<8x128xf32> -> vector<8x128xf32>
    %221 = arith.addf %218, %220 : vector<8x128xf32>
    %222 = arith.negf %221 : vector<8x128xf32>
    %223 = math.exp %222 : vector<8x128xf32>
    %cst_49 = arith.constant 1.000000e+00 : f32
    %224 = vector.broadcast %cst_49 : f32 to vector<8x128xf32>
    %225 = arith.addf %224, %223 : vector<8x128xf32>
    %226 = arith.divf %224, %225 : vector<8x128xf32>
    %227 = vector.extract_strided_slice %226 {offsets = [0, 0], sizes = [8, 32], strides = [1, 1]} : vector<8x128xf32> to vector<8x32xf32>
    %228 = vector.extract_strided_slice %226 {offsets = [0, 32], sizes = [8, 32], strides = [1, 1]} : vector<8x128xf32> to vector<8x32xf32>
    %229 = vector.extract_strided_slice %226 {offsets = [0, 96], sizes = [8, 32], strides = [1, 1]} : vector<8x128xf32> to vector<8x32xf32>
    %230 = vector.extract_strided_slice %221 {offsets = [0, 64], sizes = [8, 32], strides = [1, 1]} : vector<8x128xf32> to vector<8x32xf32>
    %231 = math.tanh %230 : vector<8x32xf32>
    %232 = arith.mulf %228, %205 : vector<8x32xf32>
    %233 = arith.mulf %227, %231 : vector<8x32xf32>
    %234 = arith.addf %232, %233 : vector<8x32xf32>
    %235 = math.tanh %234 : vector<8x32xf32>
    %236 = arith.mulf %229, %235 : vector<8x32xf32>
    %cst_50 = arith.constant 0.000000e+00 : f32
    %237 = vector.broadcast %cst_50 : f32 to vector<8x32xf32>
    %238 = arith.cmpf ogt, %236, %237 : vector<8x32xf32>
    %cst_51 = arith.constant 1.000000e-01 : f32
    %239 = vector.broadcast %cst_51 : f32 to vector<8x32xf32>
    %240 = arith.mulf %239, %236 : vector<8x32xf32>
    %241 = arith.select %238, %236, %240 : vector<8x32xi1>, vector<8x32xf32>
    %242 = arith.truncf %241 : vector<8x32xf32> to vector<8x32xbf16>
    %243 = vector.extract_strided_slice %3 {offsets = [224, 0], sizes = [32, 128], strides = [1, 1]} : vector<256x128xbf16> to vector<32x128xbf16>
    %cst_52 = arith.constant dense<0.000000e+00> : vector<8x128xf32>
    %244 = tpu.matmul %242, %243, %cst_52 {dimension_numbers = #tpu.dot_dimension_numbers<[1], [0], [0], [1], [0, 0, 1, 1], [], []>} : vector<8x32xbf16>, vector<32x128xbf16>, vector<8x128xf32> -> vector<8x128xf32>
    %245 = arith.addf %216, %244 : vector<8x128xf32>
    %c0_53 = arith.constant 0 : index
    %c0_54 = arith.constant 0 : index
    %246 = vector.load %arg6[%c0_53, %c0_54] : memref<1x128xf32, #tpu.memory_space<vmem>>, vector<1x128xf32>
    %247 = vector.broadcast %246 : vector<1x128xf32> to vector<8x128xf32>
    %248 = arith.addf %245, %247 : vector<8x128xf32>
    %c0_55 = arith.constant 0 : index
    %c0_56 = arith.constant 0 : index
    %249 = vector.load %arg7[%c0_55, %c0_56] : memref<8x128xf32, #tpu.memory_space<vmem>>, vector<8x128xf32>
    tpu.vector_store %arg7[%c0_55, %c0_56], %248 {strides = array<i32>} : memref<8x128xf32, #tpu.memory_space<vmem>>, vector<8x128xf32>,
    return
  }
  func.func @transform_0(%arg0: i32) -> (i32, i32, i32) {
    %c0_i32 = arith.constant 0 : i32
    %c0_i32_0 = arith.constant 0 : i32
    %c0_i32_1 = arith.constant 0 : i32
    return %c0_i32, %arg0, %c0_i32_0 : i32, i32, i32
  }
  func.func @transform_1(%arg0: i32) -> (i32, i32) {
    %c0_i32 = arith.constant 0 : i32
    %c0_i32_0 = arith.constant 0 : i32
    %c0_i32_1 = arith.constant 0 : i32
    return %c0_i32, %c0_i32_0 : i32, i32
  }
  func.func @transform_2(%arg0: i32) -> (i32, i32) {
    %c0_i32 = arith.constant 0 : i32
    %c0_i32_0 = arith.constant 0 : i32
    %c0_i32_1 = arith.constant 0 : i32
    return %c0_i32, %c0_i32_0 : i32, i32
  }
  func.func @transform_3(%arg0: i32) -> (i32, i32) {
    %c0_i32 = arith.constant 0 : i32
    %c0_i32_0 = arith.constant 0 : i32
    %c0_i32_1 = arith.constant 0 : i32
    return %c0_i32, %c0_i32_0 : i32, i32
  }
  func.func @transform_4(%arg0: i32) -> (i32, i32) {
    %c0_i32 = arith.constant 0 : i32
    %c0_i32_0 = arith.constant 0 : i32
    %c0_i32_1 = arith.constant 0 : i32
    return %c0_i32, %c0_i32_0 : i32, i32
  }
  func.func @transform_5(%arg0: i32) -> (i32, i32) {
    %c0_i32 = arith.constant 0 : i32
    %c0_i32_0 = arith.constant 0 : i32
    %c0_i32_1 = arith.constant 0 : i32
    return %c0_i32, %c0_i32_0 : i32, i32
  }
  func.func @transform_6(%arg0: i32) -> (i32, i32) {
    %c0_i32 = arith.constant 0 : i32
    %c0_i32_0 = arith.constant 0 : i32
    return %arg0, %c0_i32 : i32, i32
  }
}

</mosaic_0001>

<bundles_post_ra>
// kernel: tpu_custom_call.1
= control target key start
LH: loop header
LB: loop body
LE: loop exit
PB: predicated region body
PF: predicated region fallthrough
CT: control target
= control target key end

     0   :  { %11 = vsyncpa [#allocation3], 0  ;;  %s1992_s0 = inlined_call_operand.vmem [shape: f32[8,8,4], index: 0, kind: input, shape index: {}]   ;;  %s1993_s1 = inlined_call_operand.vmem [shape: bf16[4,128], index: 1, kind: input, shape index: {}]   ;;  %s1994_s2 = inlined_call_operand.vmem [shape: bf16[32,128], index: 2, kind: input, shape index: {}]   ;;  %s1995_s3 = inlined_call_operand.vmem [shape: f32[1,128], index: 3, kind: input, shape index: {}]   ;;  %s1996_s4 = inlined_call_operand.hbm [shape: bf16[256,128], index: 4, kind: input, shape index: {}]   ;;  %s1997_s5 = inlined_call_operand.vmem [shape: f32[1,128], index: 5, kind: input, shape index: {}]   ;;  %s1998_s6 = inlined_call_operand.hbm [shape: f32[8,128], index: 6, kind: output, shape index: {}]  }
   0x1   :  { %12 = vsyncpa [#allocation4], 0  ;;  %s1665_s21 = smov [#allocation2]   ;;  %s1617_s25 = scalar_lea.hbm %s1996_s4, 2048 }
   0x2   :  { %s26_s22 = sshll.u32 %s1665_s21, 4  ;;  %p1618_p0 = scmp.ne.s32.totalorder %s1996_s4, %s1617_s25  ;;  %s27_s22 = int_to_ptr.vmem [resolvable:$true] %s26_s22 }
   0x3   :  { %p1621_p1 = scmp.lt.u32.totalorder %s1617_s25, %s1996_s4 }
   0x5   :  { %p1623_p2 = pnand %p1621_p1, %p1618_p0 }
   0x7   :  { %1626 = shalt.err (!%p1623_p2)
}
   0x8   :  { %s1627_s30 = scalar_lea.vmem %s27_s22, 2048  ;;  %p1632_p4 = scmp.lt.s32.totalorder %s27_s22, %s27_s22 }
   0x9   :  { %p1628_p3 = scmp.ne.s32.totalorder %s27_s22, %s1627_s30  ;;  %p1633_p5 = scmp.lt.s32.totalorder %s1627_s30, %s1627_s30 }
   0xb   :  { %p1634_p6 = por %p1633_p5, %p1632_p4 }
   0xd   :  { %p1635_p7 = pnand %p1634_p6, %p1628_p3 }
   0xf   :  { %1638 = shalt.err (!%p1635_p7)
}
  0x10   :  { %s1666_s7 = smov 64   ;;  %s1667_s8 = smov 4  }
  0x11   :  { %32 = dma.hbm_to_vmem [thread:$0]  %s1996_s4, 2048, %s27_s22, [#allocation3], %s1666_s7, %s1666_s7, %s1667_s8  }
  0x12   :  { %1661 = dma.done.wait [#allocation3], 2048  }
  0x13   :  { %1662 = vsyncadd [#allocation3], 4294965248  ;;  %v1668_v0 = vmov 0.0   ;;  %vm1669_vm0 = vmmov 0   ;;  %vm108_vm1 = vcmask 1041408   ;;  %v1731_v3 = vld [vmem:[%s1994_s2] sm:$0xff]  }
  0x14   :  { %1398 = vmatprep.subr.bf16.mxu1 %v1668_v0  ;;  %1402 = vmatprep.mubr.msk.bf16.mxu1 %vm1669_vm0, %v1668_v0  ;;  %v47_v1 = vld [vmem:[%s1993_s1] sm:$0x3]  ;;  %v40_v5 = vld [vmem:[%s1992_s0 + $0x8] sm:$0xff]  ;;  %vm95_vm2 = vcmask 31744   ;;  %v41_v7 = vld [vmem:[%s1992_s0 + $0x10] sm:$0xff]  ;;  %v1670_v11 = vmov 0  }
  0x15   :  { %1526 = vmatprep.subr.msk.bf16.mxu0 %vm108_vm1, %v47_v1  ;;  %v110_v2 = vsel %vm108_vm1, %v47_v1, 0  ;;  %v39_v4 = vld [vmem:[%s1992_s0] sm:$0xff]  ;;  %v42_v8 = vld [vmem:[%s1992_s0 + $0x18] sm:$0xff]  ;;  %1399 = vmatpush3.bf16.msra.mxu1 %v1731_v3  ;;  %v1749_v10 = vld [vmem:[%s1994_s2 + $0x8] sm:$0xff]   ;;  %vm189_vm3 = vcmask 261120   ;;  %s1672_s9 = smov [#allocation5]  }
  0x16   :  { %1389 = vmatpush3.bf16.msra.mxu0 %v110_v2  ;;  %v84_v6 = vpack.c.bf16 %v40_v5, %v39_v4  ;;  %v85_v9 = vpack.c.bf16 %v42_v8, %v41_v7  ;;  %1400 = vmatprep.subr.bf16.mxu1 %v1668_v0  ;;  %v1766_v12 = vld [vmem:[%s1995_s3] ss:$0 sm:$0xff]  ;;  %s1671_s3 = smov 32   ;;  %v1537_v54 = vld [vmem:[#allocation2 + $0x10] sm:$0xff]   ;;  %v44_v56 = vld [vmem:[%s1992_s0 + $0x28] sm:$0xff]  ;;  %s1279_s10 = sshll.u32 %s1672_s9, 4  ;;  %s1280_s10 = int_to_ptr.vmem [resolvable:$true] %s1279_s10 }
  0x17   :  { %1414 = vmatprep.subr.bf16.mxu0 %v1668_v0  ;;  %v43_v55 = vld [vmem:[%s1992_s0 + $0x20] sm:$0xff]  ;;  %v45_v58 = vld [vmem:[%s1992_s0 + $0x30] sm:$0xff]  ;;  %v46_v59 = vld [vmem:[%s1992_s0 + $0x38] sm:$0xff]  ;;  %s1639_s11 = scalar_lea.vmem %s1280_s10, 128  ;;  %p1644_p9 = scmp.lt.s32.totalorder %s1280_s10, %s1280_s10 }
  0x18   :  { %1390 = vmatprep.mubr.msk.bf16.mxu0 %vm95_vm2, %v84_v6  ;;  %v86_v57 = vpack.c.bf16 %v44_v56, %v43_v55  ;;  %v87_v60 = vpack.c.bf16 %v46_v59, %v45_v58  ;;  %v1538_v61 = vld [vmem:[#allocation2 + $0x18] sm:$0xff]   ;;  %p1640_p8 = scmp.ne.s32.totalorder %s1280_s10, %s1639_s11  ;;  %p1645_p10 = scmp.lt.s32.totalorder %s1639_s11, %s1639_s11 }
  0x19   :  { %1391 = vmatmul.mubr.msk.bf16.vlgmr.msra.gmra.mrb[0].mxu0 %vm95_vm2, %v85_v9  ;;  %1401 = vmatpush3.bf16.msra.mxu1 %v1749_v10 }
  0x1a   :  { %1406 = vmatprep.subr.bf16.mxu1 %v1668_v0  ;;  %1415 = vmatpush3.bf16.msra.mxu0 %v1537_v54  ;;  %p1646_p11 = por %p1645_p10, %p1644_p9 }
  0x1b   :  { %1394 = vmatprep.mubr.msk.bf16.mxu0 %vm95_vm2, %v86_v57  ;;  %1416 = vmatprep.subr.bf16.mxu0 %v1668_v0 }
  0x1c   :  { %1403 = vmatmul.mubr.bf16.vlgmr.msra.gmra.mrb[0].mxu1 %v1670_v11  ;;  %p1647_p12 = pnand %p1646_p11, %p1640_p8 }
  0x1d   :  { %1407 = vmatpush3.bf16.msra.mxu1 %v1731_v3  ;;  %1410 = vmatprep.mubr.msk.bf16.mxu1 %vm1669_vm0, %v1668_v0 }
  0x1e   :  { %1408 = vmatprep.subr.bf16.mxu1 %v1668_v0  ;;  %1417 = vmatpush3.bf16.msra.mxu0 %v1538_v61 }
  0x1f   :  { %1430 = vmatprep.subr.bf16.mxu0 %v1668_v0 }
  0x21   :  { %1409 = vmatpush3.bf16.msra.mxu1 %v1749_v10  ;;  %1395 = vmatmul.mubr.msk.bf16.gmra.mrb[4].mxu0 %vm95_vm2, %v87_v60 }
  0x22   :  { %1422 = vmatprep.subr.bf16.mxu1 %v1668_v0  ;;  %1418 = vmatprep.mubr.msk.bf16.mxu0 %vm1669_vm0, %v1668_v0 }
  0xec   :  { %v1768_v13 = vpop.f32.mrb[0].mxu0 }
  0xed   :  { %v146_v14 = vpop.f32.mrb[1].mxu0 }
  0xee   :  { %v147_v15 = vadd.f32 %v1766_v12, %v146_v14  ;;  %v1771_v16 = vpop.f32.mrb[2].mxu0 }
  0xef   :  { %v149_v17 = vpop.f32.mrb[3].mxu0  ;;  %v227_v18 = vpop.f32.mrb[0].mxu1 }
  0xf0   :  { %v233_v19 = vadd.f32 %v227_v18, %v147_v15  ;;  %v1404_v20 = vpop.f32.mrb[1].mxu1  ;;  %v150_v38 = vadd.f32 %v1766_v12, %v149_v17 }
  0xf1   :  { %v230_v21 = vpop.f32.mrb[2].mxu1 }
  0xf2   :  { %v1405_v22 = vpop.f32.mrb[3].mxu1  ;;  %1553 = vtanh.f32 %v233_v19  ;;  %v1295_v24 = vmul.f32 -1.442695, %v233_v19  ;;  %v155_v21 = vadd.f32 %v1768_v13, %v1766_v12 }
  0xf4   :  { %1555 = vpow2.f32 %v1295_v24  ;;  %v1811_v7 = vpop.f32.mrb[4].mxu0 }
  0xf5   :  { %v1813_v8 = vpop.f32.mrb[5].mxu0 }
  0xf6   :  { %v1815_v9 = vpop.f32.mrb[6].mxu0 }
  0xf7   :  { %v1817_v11 = vpop.f32.mrb[7].mxu0 }
  0xfc   :  { %v1554_v23 = vpop.eup %1553 }
  0xfd   :  { %243 = vrot.lane.b32.xlu0 %v1554_v23, %s1666_s7 }
  0xfe   :  { %v1556_v25 = vpop.eup %1555 }
  0xff   :  { %v237_v26 = vadd.f32 1.0, %v1556_v25 }
 0x101   :  { %1557 = vrcp.f32 %v237_v26 }
 0x10b   :  { %v1558_v27 = vpop.eup %1557 }
 0x10c   :  { %v241_v30 = vmul.f32 0.0, %v1558_v27 }
 0x16f   :  { %v244_v28 = vpop.permute.xlu0 %243 }
 0x170   :  { %v246_v29 = vmul.f32 %v1558_v27, %v244_v28 }
 0x172   :  { %248 = vrot.lane.b32.xlu0 %v246_v29, %s1671_s3 }
 0x1e4   :  { %v249_v31 = vpop.permute.xlu0 %248 }
 0x1e5   :  { %v251_v32 = vadd.f32 %v249_v31, %v241_v30 }
 0x1e7   :  { %1559 = vtanh.f32 %v251_v32 }
 0x1f1   :  { %v1560_v33 = vpop.eup %1559 }
 0x1f2   :  { %254 = vrot.lane.b32.xlu1 %v1560_v33, %s1666_s7 }
 0x264   :  { %v255_v34 = vpop.permute.xlu1 %254 }
 0x265   :  { %v1776_v35 = vmul.f32 %v1558_v27, %v255_v34 }
 0x267   :  { %v262_v36 = vpack.c.bf16 %v1776_v35, %v1776_v35  ;;  %vm258_vm5 = vcmp.gt.f32.partialorder %v1776_v35, 0.0 }
 0x269   :  { %264 = vrot.lane.b32.xlu1 %v262_v36, %s1671_s3 }
 0x2db   :  { %v265_v37 = vpop.permute.xlu1 %264 }
 0x2dc   :  { %1411 = vmatmul.mubr.msk.bf16.vlgmr.msra.gmra.mrb[4].mxu1 %vm189_vm3, %v265_v37 }
 0x2dd   :  { %1426 = vmatprep.mubr.msk.bf16.mxu1 %vm1669_vm0, %v1668_v0 }
 0x3af   :  { %v303_v39 = vpop.f32.mrb[4].mxu1 }
 0x3b0   :  { %v309_v40 = vadd.f32 %v303_v39, %v150_v38  ;;  %v1412_v41 = vpop.f32.mrb[5].mxu1 }
 0x3b1   :  { %v306_v42 = vpop.f32.mrb[6].mxu1 }
 0x3b2   :  { %1561 = vtanh.f32 %v309_v40  ;;  %v1413_v43 = vpop.f32.mrb[7].mxu1  ;;  %v1297_v45 = vmul.f32 -1.442695, %v309_v40  ;;  %v158_v42 = vadd.f32 %v1771_v16, %v1766_v12 }
 0x3b4   :  { %1563 = vpow2.f32 %v1297_v45 }
 0x3bc   :  { %v1562_v44 = vpop.eup %1561 }
 0x3bd   :  { %319 = vrot.lane.b32.xlu0 %v1562_v44, %s1666_s7 }
 0x3be   :  { %v1564_v46 = vpop.eup %1563 }
 0x3bf   :  { %v313_v47 = vadd.f32 1.0, %v1564_v46 }
 0x3c1   :  { %1565 = vrcp.f32 %v313_v47 }
 0x3cb   :  { %v1566_v48 = vpop.eup %1565 }
 0x3cc   :  { %v317_v51 = vmul.f32 %v1566_v48, %v251_v32 }
 0x42f   :  { %v320_v49 = vpop.permute.xlu0 %319 }
 0x430   :  { %v322_v50 = vmul.f32 %v1566_v48, %v320_v49 }
 0x432   :  { %324 = vrot.lane.b32.xlu1 %v322_v50, %s1671_s3 }
 0x4a4   :  { %v325_v52 = vpop.permute.xlu1 %324 }
 0x4a5   :  { %v1787_v53 = vadd.f32 %v325_v52, %v317_v51 }
 0x4a7   :  { %1567 = vtanh.f32 %v1787_v53 }
 0x4b1   :  { %v1568_v62 = vpop.eup %1567 }
 0x4b2   :  { %330 = vrot.lane.b32.xlu0 %v1568_v62, %s1666_s7  ;;  %v163_v62 = vadd.f32 %v1766_v12, %v1813_v8 }
 0x524   :  { %v331_v63 = vpop.permute.xlu0 %330 }
 0x525   :  { %v333_v1 = vmul.f32 %v1566_v48, %v331_v63 }
 0x527   :  { %v335_v2 = vmul.f32 0.1, %v333_v1  ;;  %v454_v4 = vpack.c.bf16 %v333_v1, %v333_v1  ;;  %vm334_vm4 = vcmp.gt.f32.partialorder %v333_v1, 0.0 }
 0x529   :  { %456 = vrot.lane.b32.xlu0 %v454_v4, %s1671_s3  ;;  %v336_v5 = vsel %vm334_vm4, %v333_v1, %v335_v2 }
 0x52a   :  { %v337_v6 = vpack.c.bf16 %v336_v5, %v336_v5 }
 0x52c   :  { %339 = vrot.lane.b32.xlu1 %v337_v6, %s1671_s3 }
 0x59b   :  { %v457_v15 = vpop.permute.xlu0 %456 }
 0x59e   :  { %v340_v14 = vpop.permute.xlu1 %339 }
 0x59f   :  { %1419 = vmatmul.mubr.msk.bf16.vlgmr.msra.gmra.mrb[8].mxu0 %vm189_vm3, %v340_v14 }
 0x5a0   :  { %1431 = vmatpush3.bf16.msra.mxu0 %v1731_v3  ;;  %1434 = vmatprep.mubr.msk.bf16.mxu0 %vm1669_vm0, %v1668_v0 }
 0x5a1   :  { %1432 = vmatprep.subr.bf16.mxu0 %v1668_v0 }
 0x5a4   :  { %1433 = vmatpush3.bf16.msra.mxu0 %v1749_v10 }
 0x5a5   :  { %1446 = vmatprep.subr.bf16.mxu0 %v1668_v0 }
 0x5a7   :  { %1435 = vmatmul.mubr.msk.bf16.vlgmr.msra.gmra.mrb[12].mxu0 %vm189_vm3, %v457_v15 }
 0x5a8   :  { %1447 = vmatpush3.bf16.msra.mxu0 %v1731_v3  ;;  %1450 = vmatprep.mubr.msk.bf16.mxu0 %vm1669_vm0, %v1668_v0 }
 0x5a9   :  { %1448 = vmatprep.subr.bf16.mxu0 %v1668_v0 }
 0x5ac   :  { %1449 = vmatpush3.bf16.msra.mxu0 %v1749_v10 }
 0x5ad   :  { %1462 = vmatprep.subr.bf16.mxu0 %v1668_v0 }
 0x672   :  { %v1833_v17 = vpop.f32.mrb[8].mxu0 }
 0x673   :  { %v1420_v18 = vpop.f32.mrb[9].mxu0 }
 0x674   :  { %v393_v19 = vpop.f32.mrb[10].mxu0 }
 0x675   :  { %v1421_v20 = vpop.f32.mrb[11].mxu0 }
 0x67a   :  { %v495_v22 = vpop.f32.mrb[12].mxu0 }
 0x67b   :  { %v501_v23 = vadd.f32 %v495_v22, %v155_v21  ;;  %v1436_v24 = vpop.f32.mrb[13].mxu0 }
 0x67c   :  { %v498_v25 = vpop.f32.mrb[14].mxu0 }
 0x67d   :  { %1569 = vtanh.f32 %v501_v23  ;;  %v1437_v26 = vpop.f32.mrb[15].mxu0  ;;  %v1305_v28 = vmul.f32 -1.442695, %v501_v23 }
 0x67f   :  { %1571 = vpow2.f32 %v1305_v28 }
 0x687   :  { %v1570_v27 = vpop.eup %1569 }
 0x688   :  { %511 = vrot.lane.b32.xlu1 %v1570_v27, %s1666_s7 }
 0x689   :  { %v1572_v29 = vpop.eup %1571 }
 0x68a   :  { %v505_v30 = vadd.f32 1.0, %v1572_v29  ;;  %v166_v29 = vadd.f32 %v1766_v12, %v1817_v11 }
 0x68c   :  { %1573 = vrcp.f32 %v505_v30 }
 0x696   :  { %v1574_v31 = vpop.eup %1573 }
 0x697   :  { %v509_v13 = vmul.f32 %v1574_v31, %v1787_v53 }
 0x6fa   :  { %v512_v32 = vpop.permute.xlu1 %511 }
 0x6fb   :  { %v514_v33 = vmul.f32 %v1574_v31, %v512_v32 }
 0x6fd   :  { %516 = vrot.lane.b32.xlu0 %v514_v33, %s1671_s3 }
 0x76f   :  { %v517_v34 = vpop.permute.xlu0 %516 }
 0x770   :  { %v519_v36 = vadd.f32 %v517_v34, %v509_v13 }
 0x772   :  { %1575 = vtanh.f32 %v519_v36 }
 0x77c   :  { %v1576_v37 = vpop.eup %1575 }
 0x77d   :  { %522 = vrot.lane.b32.xlu1 %v1576_v37, %s1666_s7 }
 0x7ef   :  { %v523_v38 = vpop.permute.xlu1 %522 }
 0x7f0   :  { %v1841_v39 = vmul.f32 %v1574_v31, %v523_v38 }
 0x7f2   :  { %v589_v40 = vpack.c.bf16 %v1841_v39, %v1841_v39  ;;  %vm526_vm8 = vcmp.gt.f32.partialorder %v1841_v39, 0.0 }
 0x7f4   :  { %591 = vrot.lane.b32.xlu0 %v589_v40, %s1671_s3 }
 0x866   :  { %v592_v41 = vpop.permute.xlu0 %591 }
 0x867   :  { %1451 = vmatmul.mubr.msk.bf16.vlgmr.msra.gmra.mrb[16].mxu0 %vm189_vm3, %v592_v41 }
 0x868   :  { %1463 = vmatpush3.bf16.msra.mxu0 %v1731_v3  ;;  %1466 = vmatprep.mubr.msk.bf16.mxu0 %vm1669_vm0, %v1668_v0 }
 0x869   :  { %1464 = vmatprep.subr.bf16.mxu0 %v1668_v0 }
 0x86c   :  { %1465 = vmatpush3.bf16.msra.mxu0 %v1749_v10 }
 0x86d   :  { %1478 = vmatprep.subr.bf16.mxu0 %v1668_v0 }
 0x93a   :  { %v630_v43 = vpop.f32.mrb[16].mxu0 }
 0x93b   :  { %v636_v44 = vadd.f32 %v630_v43, %v158_v42  ;;  %v1452_v45 = vpop.f32.mrb[17].mxu0 }
 0x93c   :  { %v633_v46 = vpop.f32.mrb[18].mxu0 }
 0x93d   :  { %1577 = vtanh.f32 %v636_v44  ;;  %v1453_v47 = vpop.f32.mrb[19].mxu0  ;;  %v1310_v49 = vmul.f32 -1.442695, %v636_v44 }
 0x93f   :  { %1579 = vpow2.f32 %v1310_v49 }
 0x947   :  { %v1578_v48 = vpop.eup %1577 }
 0x948   :  { %646 = vrot.lane.b32.xlu1 %v1578_v48, %s1666_s7 }
 0x949   :  { %v1580_v50 = vpop.eup %1579 }
 0x94a   :  { %v640_v51 = vadd.f32 1.0, %v1580_v50  ;;  %v171_v50 = vadd.f32 %v1811_v7, %v1766_v12 }
 0x94c   :  { %1581 = vrcp.f32 %v640_v51 }
 0x956   :  { %v1582_v52 = vpop.eup %1581 }
 0x957   :  { %v644_v16 = vmul.f32 %v1582_v52, %v519_v36 }
 0x9ba   :  { %v647_v53 = vpop.permute.xlu1 %646 }
 0x9bb   :  { %v649_v54 = vmul.f32 %v1582_v52, %v647_v53 }
 0x9bd   :  { %651 = vrot.lane.b32.xlu0 %v649_v54, %s1671_s3 }
 0xa2f   :  { %v652_v55 = vpop.permute.xlu0 %651 }
 0xa30   :  { %v654_v56 = vadd.f32 %v652_v55, %v644_v16 }
 0xa32   :  { %1583 = vtanh.f32 %v654_v56 }
 0xa3c   :  { %v1584_v57 = vpop.eup %1583 }
 0xa3d   :  { %657 = vrot.lane.b32.xlu1 %v1584_v57, %s1666_s7 }
 0xaaf   :  { %v658_v58 = vpop.permute.xlu1 %657 }
 0xab0   :  { %v1858_v59 = vmul.f32 %v1582_v52, %v658_v58 }
 0xab2   :  { %v724_v60 = vpack.c.bf16 %v1858_v59, %v1858_v59  ;;  %vm661_vm6 = vcmp.gt.f32.partialorder %v1858_v59, 0.0 }
 0xab4   :  { %726 = vrot.lane.b32.xlu0 %v724_v60, %s1671_s3 }
 0xb26   :  { %v727_v61 = vpop.permute.xlu0 %726 }
 0xb27   :  { %1467 = vmatmul.mubr.msk.bf16.vlgmr.msra.gmra.mrb[20].mxu0 %vm189_vm3, %v727_v61 }
 0xb28   :  { %1479 = vmatpush3.bf16.msra.mxu0 %v1731_v3  ;;  %1482 = vmatprep.mubr.msk.bf16.mxu0 %vm1669_vm0, %v1668_v0 }
 0xb29   :  { %1480 = vmatprep.subr.bf16.mxu0 %v1668_v0 }
 0xb2c   :  { %1481 = vmatpush3.bf16.msra.mxu0 %v1749_v10 }
 0xb2d   :  { %1494 = vmatprep.subr.bf16.mxu0 %v1668_v0 }
 0xbfa   :  { %v765_v63 = vpop.f32.mrb[20].mxu0 }
 0xbfb   :  { %v771_v1 = vadd.f32 %v765_v63, %v163_v62  ;;  %v1468_v2 = vpop.f32.mrb[21].mxu0 }
 0xbfc   :  { %v768_v4 = vpop.f32.mrb[22].mxu0 }
 0xbfd   :  { %1585 = vtanh.f32 %v771_v1  ;;  %v1469_v5 = vpop.f32.mrb[23].mxu0  ;;  %v1315_v14 = vmul.f32 -1.442695, %v771_v1 }
 0xbff   :  { %1587 = vpow2.f32 %v1315_v14 }
 0xc07   :  { %v1586_v6 = vpop.eup %1585 }
 0xc08   :  { %781 = vrot.lane.b32.xlu1 %v1586_v6, %s1666_s7  ;;  %v174_v6 = vadd.f32 %v1815_v9, %v1766_v12  ;;  %v259_v12 = vmul.f32 0.1, %v1776_v35 }
 0xc09   :  { %v1588_v15 = vpop.eup %1587 }
 0xc0a   :  { %v775_v18 = vadd.f32 1.0, %v1588_v15 }
 0xc0c   :  { %1589 = vrcp.f32 %v775_v18 }
 0xc16   :  { %v1590_v19 = vpop.eup %1589 }
 0xc17   :  { %v779_v8 = vmul.f32 %v1590_v19, %v654_v56 }
 0xc7a   :  { %v782_v20 = vpop.permute.xlu1 %781 }
 0xc7b   :  { %v784_v21 = vmul.f32 %v1590_v19, %v782_v20 }
 0xc7d   :  { %786 = vrot.lane.b32.xlu0 %v784_v21, %s1671_s3 }
 0xcef   :  { %v787_v22 = vpop.permute.xlu0 %786 }
 0xcf0   :  { %v789_v23 = vadd.f32 %v787_v22, %v779_v8  ;;  %v1539_v8 = vld [vmem:[#allocation2] sm:$0xff]  }
 0xcf1   :  { %1423 = vmatpush3.bf16.msra.mxu1 %v1539_v8 }
 0xcf2   :  { %1591 = vtanh.f32 %v789_v23  ;;  %1424 = vmatprep.subr.bf16.mxu1 %v1668_v0 }
 0xcfc   :  { %v1592_v24 = vpop.eup %1591 }
 0xcfd   :  { %792 = vrot.lane.b32.xlu1 %v1592_v24, %s1666_s7 }
 0xd6f   :  { %v793_v25 = vpop.permute.xlu1 %792 }
 0xd70   :  { %v1875_v26 = vmul.f32 %v1590_v19, %v793_v25  ;;  %v1540_v25 = vld [vmem:[#allocation2 + $0x8] sm:$0xff]  }
 0xd71   :  { %1425 = vmatpush3.bf16.msra.mxu1 %v1540_v25 }
 0xd72   :  { %v859_v27 = vpack.c.bf16 %v1875_v26, %v1875_v26  ;;  %1438 = vmatprep.subr.bf16.mxu1 %v1668_v0  ;;  %vm796_vm9 = vcmp.gt.f32.partialorder %v1875_v26, 0.0 }
 0xd74   :  { %861 = vrot.lane.b32.xlu0 %v859_v27, %s1671_s3 }
 0xde6   :  { %v862_v28 = vpop.permute.xlu0 %861 }
 0xde7   :  { %1483 = vmatmul.mubr.msk.bf16.vlgmr.msra.gmra.mrb[24].mxu0 %vm189_vm3, %v862_v28 }
 0xde8   :  { %1495 = vmatpush3.bf16.msra.mxu0 %v1731_v3  ;;  %1498 = vmatprep.mubr.msk.bf16.mxu0 %vm1669_vm0, %v1668_v0 }
 0xde9   :  { %1496 = vmatprep.subr.bf16.mxu0 %v1668_v0 }
 0xdec   :  { %1497 = vmatpush3.bf16.msra.mxu0 %v1749_v10 }
 0xded   :  { %1510 = vmatprep.subr.bf16.mxu0 %v1668_v0 }
 0xeba   :  { %v900_v30 = vpop.f32.mrb[24].mxu0 }
 0xebb   :  { %v906_v31 = vadd.f32 %v900_v30, %v166_v29  ;;  %v1484_v32 = vpop.f32.mrb[25].mxu0  ;;  %v662_v29 = vmul.f32 0.1, %v1858_v59  ;;  %v260_v30 = vsel %vm258_vm5, %v1776_v35, %v259_v12 }
 0xebc   :  { %v903_v33 = vpop.f32.mrb[26].mxu0 }
 0xebd   :  { %1593 = vtanh.f32 %v906_v31  ;;  %v1485_v13 = vpop.f32.mrb[27].mxu0  ;;  %v1320_v36 = vmul.f32 -1.442695, %v906_v31  ;;  %v261_v31 = vpack.c.bf16 %v260_v30, %v260_v30  ;;  %v663_v33 = vsel %vm661_vm6, %v1858_v59, %v662_v29  ;;  %v1542_v59 = vld [vmem:[#allocation2 + $0x28] sm:$0xff]  }
 0xebe   :  { %v664_v13 = vpack.c.bf16 %v663_v33, %v663_v33 }
 0xebf   :  { %1595 = vpow2.f32 %v1320_v36 }
 0xec7   :  { %v1594_v34 = vpop.eup %1593 }
 0xec8   :  { %916 = vrot.lane.b32.xlu1 %v1594_v34, %s1666_s7 }
 0xec9   :  { %v1596_v37 = vpop.eup %1595 }
 0xeca   :  { %v910_v38 = vadd.f32 1.0, %v1596_v37 }
 0xecc   :  { %1597 = vrcp.f32 %v910_v38 }
 0xed6   :  { %v1598_v40 = vpop.eup %1597 }
 0xed7   :  { %v914_v11 = vmul.f32 %v1598_v40, %v789_v23 }
 0xf3a   :  { %v917_v41 = vpop.permute.xlu1 %916 }
 0xf3b   :  { %v919_v42 = vmul.f32 %v1598_v40, %v917_v41 }
 0xf3d   :  { %921 = vrot.lane.b32.xlu0 %v919_v42, %s1671_s3  ;;  %v527_v42 = vmul.f32 0.1, %v1841_v39 }
 0xfaf   :  { %v922_v43 = vpop.permute.xlu0 %921 }
 0xfb0   :  { %v924_v44 = vadd.f32 %v922_v43, %v914_v11  ;;  %v797_v43 = vmul.f32 0.1, %v1875_v26 }
 0xfb2   :  { %1599 = vtanh.f32 %v924_v44 }
 0xfbc   :  { %v1600_v45 = vpop.eup %1599 }
 0xfbd   :  { %927 = vrot.lane.b32.xlu1 %v1600_v45, %s1666_s7 }
0x102f   :  { %v928_v46 = vpop.permute.xlu1 %927 }
0x1030   :  { %v1892_v47 = vmul.f32 %v1598_v40, %v928_v46  ;;  %v1541_v40 = vld [vmem:[#allocation2 + $0x20] sm:$0xff]  }
0x1032   :  { %v994_v48 = vpack.c.bf16 %v1892_v47, %v1892_v47  ;;  %v932_v32 = vmul.f32 0.1, %v1892_v47  ;;  %vm931_vm7 = vcmp.gt.f32.partialorder %v1892_v47, 0.0 }
0x1034   :  { %996 = vrot.lane.b32.xlu0 %v994_v48, %s1671_s3  ;;  %v933_v34 = vsel %vm931_vm7, %v1892_v47, %v932_v32  ;;  %v798_v47 = vsel %vm796_vm9, %v1875_v26, %v797_v43 }
0x1035   :  { %v934_v36 = vpack.c.bf16 %v933_v34, %v933_v34  ;;  %v799_v48 = vpack.c.bf16 %v798_v47, %v798_v47 }
0x10a6   :  { %v997_v49 = vpop.permute.xlu0 %996 }
0x10a7   :  { %1499 = vmatmul.mubr.msk.bf16.vlgmr.msra.gmra.mrb[28].mxu0 %vm189_vm3, %v997_v49 }
0x10a8   :  { %1511 = vmatpush3.bf16.msra.mxu0 %v1731_v3  ;;  %1514 = vmatprep.mubr.msk.bf16.mxu0 %vm1669_vm0, %v1668_v0 }
0x10a9   :  { %1512 = vmatprep.subr.bf16.mxu0 %v1668_v0 }
0x10ac   :  { %1513 = vmatpush3.bf16.msra.mxu0 %v1749_v10 }
0x117a   :  { %v1035_v51 = vpop.f32.mrb[28].mxu0 }
0x117b   :  { %v1041_v52 = vadd.f32 %v1035_v51, %v171_v50  ;;  %v1500_v53 = vpop.f32.mrb[29].mxu0 }
0x117c   :  { %v1038_v54 = vpop.f32.mrb[30].mxu0 }
0x117d   :  { %1601 = vtanh.f32 %v1041_v52  ;;  %v1501_v16 = vpop.f32.mrb[31].mxu0  ;;  %v1325_v3 = vmul.f32 -1.442695, %v1041_v52  ;;  %v1543_v52 = vld [vmem:[#allocation2 + $0x30] sm:$0xff]  }
0x117f   :  { %1603 = vpow2.f32 %v1325_v3  ;;  %v1545_v3 = vld [vmem:[#allocation2 + $0x40] sm:$0xff]  }
0x1187   :  { %v1602_v55 = vpop.eup %1601 }
0x1188   :  { %1051 = vrot.lane.b32.xlu1 %v1602_v55, %s1666_s7  ;;  %v1544_v55 = vld [vmem:[#allocation2 + $0x38] sm:$0xff]  }
0x1189   :  { %v1604_v56 = vpop.eup %1603 }
0x118a   :  { %v1045_v57 = vadd.f32 1.0, %v1604_v56 }
0x118c   :  { %1605 = vrcp.f32 %v1045_v57  ;;  %v1546_v57 = vld [vmem:[#allocation2 + $0x48] sm:$0xff]  }
0x1196   :  { %v1606_v58 = vpop.eup %1605 }
0x1197   :  { %v1049_v7 = vmul.f32 %v1606_v58, %v924_v44  ;;  %v528_v44 = vsel %vm526_vm8, %v1841_v39, %v527_v42 }
0x1198   :  { %v529_v45 = vpack.c.bf16 %v528_v44, %v528_v44 }
0x11fa   :  { %v1052_v60 = vpop.permute.xlu1 %1051 }
0x11fb   :  { %v1054_v10 = vmul.f32 %v1606_v58, %v1052_v60 }
0x11fd   :  { %1056 = vrot.lane.b32.xlu0 %v1054_v10, %s1671_s3  ;;  %v1548_v10 = vld [vmem:[#allocation2 + $0x58] sm:$0xff]  }
0x126f   :  { %v1057_v61 = vpop.permute.xlu0 %1056 }
0x1270   :  { %v1059_v62 = vadd.f32 %v1057_v61, %v1049_v7  ;;  %v1549_v7 = vld [vmem:[#allocation2 + $0x60] sm:$0xff]  }
0x1272   :  { %1607 = vtanh.f32 %v1059_v62 }
0x127c   :  { %v1608_v63 = vpop.eup %1607 }
0x127d   :  { %1062 = vrot.lane.b32.xlu1 %v1608_v63, %s1666_s7  ;;  %v1551_v63 = vld [vmem:[#allocation2 + $0x70] sm:$0xff]  }
0x12ef   :  { %v1063_v1 = vpop.permute.xlu1 %1062 }
0x12f0   :  { %v1908_v2 = vmul.f32 %v1606_v58, %v1063_v1  ;;  %v1547_v58 = vld [vmem:[#allocation2 + $0x50] sm:$0xff]  }
0x12f2   :  { %v1129_v4 = vpack.c.bf16 %v1908_v2, %v1908_v2  ;;  %v1067_v46 = vmul.f32 0.1, %v1908_v2  ;;  %vm1066_vm10 = vcmp.gt.f32.partialorder %v1908_v2, 0.0 }
0x12f4   :  { %1131 = vrot.lane.b32.xlu0 %v1129_v4, %s1671_s3  ;;  %v1068_v49 = vsel %vm1066_vm10, %v1908_v2, %v1067_v46  ;;  %v1552_v2 = vld [vmem:[#allocation2 + $0x78] sm:$0xff]  }
0x12f5   :  { %v1069_v50 = vpack.c.bf16 %v1068_v49, %v1068_v49 }
0x1366   :  { %v1132_v5 = vpop.permute.xlu0 %1131 }
0x1367   :  { %1515 = vmatmul.mubr.msk.bf16.vlgmr.msra.gmra.mrb[32].mxu0 %vm189_vm3, %v1132_v5 }
0x143a   :  { %v1170_v14 = vpop.f32.mrb[32].mxu0 }
0x143b   :  { %v1176_v15 = vadd.f32 %v1170_v14, %v174_v6  ;;  %v1516_v18 = vpop.f32.mrb[33].mxu0 }
0x143c   :  { %v1173_v19 = vpop.f32.mrb[34].mxu0 }
0x143d   :  { %1609 = vtanh.f32 %v1176_v15  ;;  %v1517_v20 = vpop.f32.mrb[35].mxu0  ;;  %v1330_v22 = vmul.f32 -1.442695, %v1176_v15 }
0x143f   :  { %1611 = vpow2.f32 %v1330_v22 }
0x1447   :  { %v1610_v21 = vpop.eup %1609 }
0x1448   :  { %1186 = vrot.lane.b32.xlu1 %v1610_v21, %s1666_s7 }
0x1449   :  { %v1612_v23 = vpop.eup %1611 }
0x144a   :  { %v1180_v24 = vadd.f32 1.0, %v1612_v23 }
0x144c   :  { %1613 = vrcp.f32 %v1180_v24 }
0x1456   :  { %v1614_v9 = vpop.eup %1613 }
0x1457   :  { %v1184_v35 = vmul.f32 %v1614_v9, %v1059_v62  ;;  %v1550_v62 = vld [vmem:[#allocation2 + $0x68] sm:$0xff]  }
0x14ba   :  { %v1187_v27 = vpop.permute.xlu1 %1186 }
0x14bb   :  { %v1189_v28 = vmul.f32 %v1614_v9, %v1187_v27 }
0x14bd   :  { %1191 = vrot.lane.b32.xlu0 %v1189_v28, %s1671_s3 }
0x14c1   :  { %397 = vrot.lane.b32.xlu0 %v261_v31, %s1671_s3 }
0x14c5   :  { %666 = vrot.lane.b32.xlu0 %v664_v13, %s1671_s3 }
0x14c9   :  { %936 = vrot.lane.b32.xlu0 %v934_v36, %s1671_s3 }
0x152f   :  { %v1192_v37 = vpop.permute.xlu0 %1191 }
0x1530   :  { %v1194_v38 = vadd.f32 %v1192_v37, %v1184_v35 }
0x1532   :  { %1615 = vtanh.f32 %v1194_v38 }
0x1533   :  { %v398_v41 = vpop.permute.xlu0 %397 }
0x1534   :  { %1427 = vmatmul.mubr.msk.bf16.vlgmr.msra.gmra.mrb[8].mxu1 %vm189_vm3, %v398_v41  ;;  %v1334_v41 = vld [vmem:[%s1997_s5] ss:$0 sm:$0xff] }
0x1535   :  { %1439 = vmatpush3.bf16.msra.mxu1 %v1541_v40  ;;  %1442 = vmatprep.mubr.msk.bf16.mxu1 %vm1669_vm0, %v1668_v0 }
0x1536   :  { %1440 = vmatprep.subr.bf16.mxu1 %v1668_v0 }
0x1537   :  { %v667_v56 = vpop.permute.xlu0 %666 }
0x1539   :  { %1441 = vmatpush3.bf16.msra.mxu1 %v1542_v59 }
0x153a   :  { %1454 = vmatprep.subr.bf16.mxu1 %v1668_v0 }
0x153b   :  { %v937_v61 = vpop.permute.xlu0 %936 }
0x153c   :  { %v1616_v11 = vpop.eup %1615 }
0x153d   :  { %1197 = vrot.lane.b32.xlu1 %v1616_v11, %s1666_s7 }
0x1541   :  { %531 = vrot.lane.b32.xlu1 %v529_v45, %s1671_s3 }
0x1545   :  { %801 = vrot.lane.b32.xlu1 %v799_v48, %s1671_s3 }
0x1549   :  { %1071 = vrot.lane.b32.xlu1 %v1069_v50, %s1671_s3 }
0x15af   :  { %v1198_v39 = vpop.permute.xlu1 %1197 }
0x15b0   :  { %v1200_v51 = vmul.f32 %v1614_v9, %v1198_v39 }
0x15b2   :  { %vm1201_vm11 = vcmp.gt.f32.partialorder %v1200_v51, 0.0  ;;  %v1202_v53 = vmul.f32 0.1, %v1200_v51 }
0x15b3   :  { %v532_v54 = vpop.permute.xlu1 %531 }
0x15b4   :  { %1443 = vmatmul.mubr.msk.bf16.vlgmr.msra.gmra.mrb[12].mxu1 %vm189_vm3, %v532_v54  ;;  %v1203_v26 = vsel %vm1201_vm11, %v1200_v51, %v1202_v53 }
0x15b5   :  { %1455 = vmatpush3.bf16.msra.mxu1 %v1543_v52  ;;  %v1204_v16 = vpack.c.bf16 %v1203_v26, %v1203_v26  ;;  %1458 = vmatprep.mubr.msk.bf16.mxu1 %vm1669_vm0, %v1668_v0 }
0x15b6   :  { %1456 = vmatprep.subr.bf16.mxu1 %v1668_v0 }
0x15b7   :  { %1206 = vrot.lane.b32.xlu0 %v1204_v16, %s1671_s3  ;;  %v802_v60 = vpop.permute.xlu1 %801 }
0x15b9   :  { %1457 = vmatpush3.bf16.msra.mxu1 %v1544_v55 }
0x15ba   :  { %1470 = vmatprep.subr.bf16.mxu1 %v1668_v0 }
0x15bb   :  { %v1072_v1 = vpop.permute.xlu1 %1071 }
0x15bc   :  { %1459 = vmatmul.mubr.msk.bf16.vlgmr.msra.gmra.mrb[16].mxu1 %vm189_vm3, %v667_v56 }
0x15bd   :  { %1471 = vmatpush3.bf16.msra.mxu1 %v1545_v3  ;;  %1474 = vmatprep.mubr.msk.bf16.mxu1 %vm1669_vm0, %v1668_v0 }
0x15be   :  { %1472 = vmatprep.subr.bf16.mxu1 %v1668_v0 }
0x15c1   :  { %1473 = vmatpush3.bf16.msra.mxu1 %v1546_v57 }
0x15c2   :  { %1486 = vmatprep.subr.bf16.mxu1 %v1668_v0 }
0x15c4   :  { %1475 = vmatmul.mubr.msk.bf16.vlgmr.msra.gmra.mrb[20].mxu1 %vm189_vm3, %v802_v60 }
0x15c5   :  { %1487 = vmatpush3.bf16.msra.mxu1 %v1547_v58  ;;  %1490 = vmatprep.mubr.msk.bf16.mxu1 %vm1669_vm0, %v1668_v0 }
0x15c6   :  { %1488 = vmatprep.subr.bf16.mxu1 %v1668_v0 }
0x15c9   :  { %1489 = vmatpush3.bf16.msra.mxu1 %v1548_v10 }
0x15ca   :  { %1502 = vmatprep.subr.bf16.mxu1 %v1668_v0 }
0x15cc   :  { %1491 = vmatmul.mubr.msk.bf16.vlgmr.msra.gmra.mrb[24].mxu1 %vm189_vm3, %v937_v61 }
0x15cd   :  { %1503 = vmatpush3.bf16.msra.mxu1 %v1549_v7  ;;  %1506 = vmatprep.mubr.msk.bf16.mxu1 %vm1669_vm0, %v1668_v0 }
0x15ce   :  { %1504 = vmatprep.subr.bf16.mxu1 %v1668_v0 }
0x15d1   :  { %1505 = vmatpush3.bf16.msra.mxu1 %v1550_v62 }
0x15d2   :  { %1518 = vmatprep.subr.bf16.mxu1 %v1668_v0 }
0x15d4   :  { %1507 = vmatmul.mubr.msk.bf16.vlgmr.msra.gmra.mrb[28].mxu1 %vm189_vm3, %v1072_v1 }
0x15d5   :  { %1519 = vmatpush3.bf16.msra.mxu1 %v1551_v63  ;;  %1522 = vmatprep.mubr.msk.bf16.mxu1 %vm1669_vm0, %v1668_v0 }
0x15d6   :  { %1520 = vmatprep.subr.bf16.mxu1 %v1668_v0 }
0x15d9   :  { %1521 = vmatpush3.bf16.msra.mxu1 %v1552_v2 }
0x1607   :  { %v448_v4 = vpop.f32.mrb[8].mxu1 }
0x1608   :  { %v449_v5 = vadd.f32 %v448_v4, %v1833_v17  ;;  %v1428_v6 = vpop.f32.mrb[9].mxu1 }
0x1609   :  { %v451_v14 = vpop.f32.mrb[10].mxu1 }
0x160a   :  { %v1429_v15 = vpop.f32.mrb[11].mxu1 }
0x1629   :  { %v1207_v18 = vpop.permute.xlu0 %1206 }
0x162a   :  { %1523 = vmatmul.mubr.msk.bf16.vlgmr.msra.gmra.mrb[32].mxu1 %vm189_vm3, %v1207_v18 }
0x1687   :  { %v582_v19 = vpop.f32.mrb[12].mxu1 }
0x1688   :  { %v588_v20 = vadd.f32 %v582_v19, %v449_v5  ;;  %v1444_v21 = vpop.f32.mrb[13].mxu1 }
0x1689   :  { %v585_v8 = vpop.f32.mrb[14].mxu1 }
0x168a   :  { %v1445_v22 = vpop.f32.mrb[15].mxu1 }
0x168f   :  { %v717_v23 = vpop.f32.mrb[16].mxu1 }
0x1690   :  { %v723_v24 = vadd.f32 %v717_v23, %v588_v20  ;;  %v1460_v25 = vpop.f32.mrb[17].mxu1 }
0x1691   :  { %v720_v12 = vpop.f32.mrb[18].mxu1 }
0x1692   :  { %v1461_v0 = vpop.f32.mrb[19].mxu1 }
0x1697   :  { %v852_v9 = vpop.f32.mrb[20].mxu1 }
0x1698   :  { %v858_v27 = vadd.f32 %v852_v9, %v723_v24  ;;  %v1476_v28 = vpop.f32.mrb[21].mxu1 }
0x1699   :  { %v855_v17 = vpop.f32.mrb[22].mxu1 }
0x169a   :  { %v1477_v29 = vpop.f32.mrb[23].mxu1 }
0x169f   :  { %v987_v30 = vpop.f32.mrb[24].mxu1 }
0x16a0   :  { %v993_v31 = vadd.f32 %v987_v30, %v858_v27  ;;  %v1492_v32 = vpop.f32.mrb[25].mxu1 }
0x16a1   :  { %v990_v33 = vpop.f32.mrb[26].mxu1 }
0x16a2   :  { %v1493_v13 = vpop.f32.mrb[27].mxu1 }
0x16a7   :  { %v1122_v34 = vpop.f32.mrb[28].mxu1 }
0x16a8   :  { %v1128_v36 = vadd.f32 %v1122_v34, %v993_v31  ;;  %v1508_v35 = vpop.f32.mrb[29].mxu1 }
0x16a9   :  { %v1125_v37 = vpop.f32.mrb[30].mxu1 }
0x16aa   :  { %v1509_v38 = vpop.f32.mrb[31].mxu1 }
0x16fd   :  { %v1257_v40 = vpop.f32.mrb[32].mxu1 }
0x16fe   :  { %v1263_v59 = vadd.f32 %v1257_v40, %v1128_v36  ;;  %v1524_v42 = vpop.f32.mrb[33].mxu1 }
0x16ff   :  { %v1260_v11 = vpop.f32.mrb[34].mxu1 }
0x1700   :  { %v1271_v43 = vadd.f32 %v1334_v41, %v1263_v59  ;;  %v1525_v44 = vpop.f32.mrb[35].mxu1 }
0x1702   :  { %1272 = vst [vmem:[#allocation5] sm:$0xff] %v1271_v43 }
0x1703   :  { %1650 = shalt.err (!%p1647_p12)
}
0x1704   :  { %s1651_s5 = scalar_lea.hbm %s1998_s6, 128 }
0x1705   :  { %p1652_p13 = scmp.ne.s32.totalorder %s1998_s6, %s1651_s5  ;;  %p1655_p0 = scmp.lt.u32.totalorder %s1651_s5, %s1998_s6 }
0x1707   :  { %p1657_p1 = pnand %p1655_p0, %p1652_p13 }
0x1709   :  { %1660 = shalt.err (!%p1657_p1)
}
0x170a   :  { %1282 = dma.vmem_to_hbm [thread:$0]  %s1280_s10, 128, %s1998_s6, [#allocation4]  }
0x170b   :  { %1663 = dma.done.wait [#allocation4], 128  }
0x170c   :  { %1664 = vsyncadd [#allocation4], 4294967168 }
0x170d   :  { %1286 = vsyncpa [#allocation3], 1 }
0x170e   :  { %1287 = vsyncpa [#allocation4], 1 }

</bundles_post_ra>
